<compile_context>
chip_gen: v6e
topology: v6e:2x2x1
jax: 0.10.0
libtpu: 0.0.40
codegen_flags: <defaults>
</compile_context>

<pallas_src>
import functools

import jax
import jax.numpy as jnp
import numpy as np
from jax.experimental import pallas as pl
from jax.experimental.pallas import tpu as pltpu


# ----------------------------------------------------------------------------
# Pallas kernel: one full SRED update step per grid iteration, grid=(N_step,)
# ----------------------------------------------------------------------------
def _sred_kernel(modulus,
                 phi_ref, hidwy_ref, a_ref, w1s_ref, w2_ref, b2_ref,
                 phi_hist_ref, phi_final_ref, rho_ref,
                 phi_sc):
    n = pl.program_id(0)

    # Carry phi across grid steps in VMEM scratch; seed it at n == 0.
    @pl.when(n == 0)
    def _init():
        phi_sc[...] = phi_ref[...]

    B, Ls = phi_ref.shape
    M = hidwy_ref.shape[0]
    two_ls = 2 * Ls

    phi = phi_sc[...]
    phi_hist_ref[...] = phi                                  # phi at START of step n

    s_re = modulus * jnp.cos(phi)                            # (B, Ls)
    s_im = modulus * jnp.sin(phi)
    s_reim = jnp.concatenate([s_re, s_im], axis=-1)          # (B, 2Ls)

    # ---- Estimate_rho for all M sensors at once -----------------------------
    # s-dependent half of the hidden layer (invariant over m -> compute once).
    hid_s = jnp.dot(s_reim, w1s_ref[...],
                    preferred_element_type=jnp.float32)      # (B, Hh)
    h = jnp.maximum(hid_s[None, :, :] + hidwy_ref[...], 0.0)  # (M, B, Hh)
    logits = (jnp.einsum('mbh,ho->mbo', h, w2_ref[...],
                         preferred_element_type=jnp.float32)
              + b2_ref[...])                                  # (M, B, 1)
    rho_all = 1.0 / (1.0 + jnp.exp(-logits))                  # (M, B, 1)

    rho_ref[...] = rho_all[..., 0]                            # (M, B) one store/step

    # ---- eta_sred for all M sensors at once ---------------------------------
    # a_ref: (M, B, Ls, 4Ls) = [G_re+H_re | H_im-G_im || G_im+H_im | G_re-H_re]
    #   u_re = sum_j (G_re+H_re)*s_re + (H_im-G_im)*s_im
    #   u_im = sum_j (G_im+H_im)*s_re + (G_re-H_re)*s_im
    a = a_ref[...]
    s_b = s_reim[None, :, None, :]                            # (1, B, 1, 2Ls)
    u_re = jnp.sum(a[..., :two_ls] * s_b, axis=-1)            # (M, B, Ls)
    u_im = jnp.sum(a[..., two_ls:] * s_b, axis=-1)            # (M, B, Ls)
    eta = s_re[None] * u_im - s_im[None] * u_re               # Im(conj(s) * u)

    eta_net = jnp.sum(rho_all * eta, axis=0)                  # (B, Ls)

    # torch semantics: the update is scaled by the LAST sensor's rho.
    phi_new = phi - rho_all[M - 1] * eta_net
    phi_sc[...] = phi_new
    phi_final_ref[...] = phi_new                              # resident, flushed at end


# ----------------------------------------------------------------------------
# Wrapper: full SRED_rep_rho forward
# ----------------------------------------------------------------------------
def sred_rep_rho_forward(phi, w_M, y_M, G_M, H_M, params, constants):
    B, Ls = phi.shape
    Ly = y_M.shape[0]
    M = constants['M']
    N_step = constants['N_step']
    modulus = float(constants['modulus'])
    W1, b1, W2, b2 = params
    Hh = W1.shape[1]

    # Split W1 along the feature-concat axis: rows [0:2Ls] -> (s.re|s.im),
    # rows [2Ls:] -> (w.re|w.im|y).
    w1_s = W1[:2 * Ls].astype(jnp.float32)                    # (2Ls, Hh)
    w1_wy = W1[2 * Ls:].astype(jnp.float32)                   # (2Lw+Ly, Hh)

    # State-independent hidden contribution for all m: ONE batched matmul in XLA.
    w_re_m = jnp.transpose(jnp.real(w_M), (2, 0, 1)).astype(jnp.float32)  # (M,B,Lw)
    w_im_m = jnp.transpose(jnp.imag(w_M), (2, 0, 1)).astype(jnp.float32)
    y_b_m = jnp.broadcast_to(jnp.transpose(y_M, (1, 0))[:, None, :],
                             (M, B, Ly)).astype(jnp.float32)               # (M,B,Ly)
    feat_wy = jnp.concatenate([w_re_m, w_im_m, y_b_m], axis=-1)            # (M,B,2Lw+Ly)
    hid_wy = (jnp.einsum('mbd,dh->mbh', feat_wy, w1_wy)
              + b1[None, None, :]).astype(jnp.float32)                     # (M,B,Hh)

    # Pre-combined, lane-packed G/H planes (both halves contract with [s.re|s.im]).
    g_re = jnp.transpose(jnp.real(G_M), (3, 0, 1, 2)).astype(jnp.float32)  # (M,B,Ls,Ls)
    g_im = jnp.transpose(jnp.imag(G_M), (3, 0, 1, 2)).astype(jnp.float32)
    h_re = jnp.transpose(jnp.real(H_M), (3, 0, 1, 2)).astype(jnp.float32)
    h_im = jnp.transpose(jnp.imag(H_M), (3, 0, 1, 2)).astype(jnp.float32)
    a_pack = jnp.concatenate(
        [g_re + h_re, h_im - g_im, g_im + h_im, g_re - h_re], axis=-1)     # (M,B,Ls,4Ls)

    kernel = functools.partial(_sred_kernel, modulus)
    grid_spec = pltpu.PrefetchScalarGridSpec(
        num_scalar_prefetch=0,
        grid=(N_step,),
        in_specs=[
            pl.BlockSpec((B, Ls), lambda n: (0, 0)),                   # phi0
            pl.BlockSpec((M, B, Hh), lambda n: (0, 0, 0)),             # hid_wy
            pl.BlockSpec((M, B, Ls, 4 * Ls), lambda n: (0, 0, 0, 0)),  # A pack
            pl.BlockSpec((2 * Ls, Hh), lambda n: (0, 0)),              # W1[s]
            pl.BlockSpec((Hh, 1), lambda n: (0, 0)),                   # W2
            pl.BlockSpec((1, 1), lambda n: (0, 0)),                    # b2
        ],
        out_specs=[
            pl.BlockSpec((None, B, Ls), lambda n: (n, 0, 0)),          # phi history
            pl.BlockSpec((B, Ls), lambda n: (0, 0)),                   # final phi
            pl.BlockSpec((None, M, B), lambda n: (n, 0, 0)),           # rho per step
        ],
        scratch_shapes=[pltpu.VMEM((B, Ls), jnp.float32)],             # phi carry
    )
    phi_hist, phi_final, rho_all = pl.pallas_call(
        kernel,
        grid_spec=grid_spec,
        out_shape=[
            jax.ShapeDtypeStruct((N_step, B, Ls), jnp.float32),
            jax.ShapeDtypeStruct((B, Ls), jnp.float32),
            jax.ShapeDtypeStruct((N_step, M, B), jnp.float32),
        ],
        compiler_params=pltpu.CompilerParams(
            dimension_semantics=("arbitrary",),       # phi carried across steps
            vmem_limit_bytes=32 * 1024 * 1024),
    )(phi.astype(jnp.float32), hid_wy, a_pack, w1_s,
      W2.astype(jnp.float32), b2.reshape(1, 1).astype(jnp.float32))

    # Rebuild s outside the kernel: s_n = modulus * exp(i * phi_n)
    phi_all = jnp.concatenate([phi_hist, phi_final[None]], axis=0)     # (N_step+1,B,Ls)
    s_stack = (modulus * jnp.exp(1j * phi_all)).astype(jnp.complex64)
    s_stack = jnp.transpose(s_stack, (1, 0, 2))                        # (B,N_step+1,Ls)
    rho_stack = jnp.transpose(rho_all, (2, 0, 1))                      # (B,N_step,M)
    return {'s_stack_batch': s_stack, 'rho_M_stack_batch': rho_stack}


# ----------------------------------------------------------------------------
# Pure-JAX reference (mirrors the torch forward semantics)
# ----------------------------------------------------------------------------
def reference_forward(phi, w_M, y_M, G_M, H_M, params, constants):
    B, Ls = phi.shape
    Ly = y_M.shape[0]
    M = constants['M']
    N_step = constants['N_step']
    modulus = constants['modulus']
    W1, b1, W2, b2 = params

    s_list, rho_list = [], []
    phi_cur = phi
    for _ in range(N_step):
        s = modulus * jnp.exp(1j * phi_cur)
        eta_net = jnp.zeros((B, Ls), jnp.float32)
        rho_m_list = []
        rho = None
        for m in range(M):
            w = w_M[:, :, m]
            y_b = jnp.broadcast_to(y_M[:, m][None, :], (B, Ly))
            x = jnp.concatenate([jnp.real(s), jnp.imag(s),
                                 jnp.real(w), jnp.imag(w), y_b], axis=1)
            h = jnp.maximum(x @ W1 + b1, 0.0)
            rho = jax.nn.sigmoid(h @ W2 + b2)                    # (B, 1)
            G = G_M[:, :, :, m]
            H = H_M[:, :, :, m]
            u = (jnp.einsum('bij,bj->bi', G, s)
                 + jnp.einsum('bij,bj->bi', H, jnp.conj(s)))
            eta = jnp.imag(jnp.conj(s) * u)
            eta_net = eta_net + rho * eta
            rho_m_list.append(rho[:, 0])
        phi_cur = phi_cur - rho * eta_net                        # last m's rho
        s_list.append(s)
        rho_list.append(jnp.stack(rho_m_list, axis=1))
    s_list.append(modulus * jnp.exp(1j * phi_cur))
    return (jnp.stack(s_list, axis=1).astype(jnp.complex64),
            jnp.stack(rho_list, axis=1))


if __name__ == "__main__":
    constants = dict(M=4, Nt=2, N=4, N_step=3, modulus=1.0, Lw=4, Ly=6)
    B = 2
    Ls = constants['Nt'] * constants['N']
    Lw, Ly, M = constants['Lw'], constants['Ly'], constants['M']
    Hh = 32
    D = 2 * Ls + 2 * Lw + Ly

    key = jax.random.PRNGKey(0)
    ks = jax.random.split(key, 10)
    phi = jax.random.uniform(ks[0], (B, Ls), jnp.float32, -jnp.pi, jnp.pi)
    w_M = (jax.random.normal(ks[1], (B, Lw, M))
           + 1j * jax.random.normal(ks[2], (B, Lw, M))).astype(jnp.complex64)
    y_M = jax.random.normal(ks[3], (Ly, M), jnp.float32)
    G_M = (0.1 * (jax.random.normal(ks[4], (B, Ls, Ls, M))
                  + 1j * jax.random.normal(ks[5], (B, Ls, Ls, M)))).astype(jnp.complex64)
    H_M = (0.1 * (jax.random.normal(ks[6], (B, Ls, Ls, M))
                  + 1j * jax.random.normal(ks[7], (B, Ls, Ls, M)))).astype(jnp.complex64)

    # deterministic Estimate_rho parameters (Linear(D,Hh) -> ReLU -> Linear(Hh,1) -> Sigmoid)
    W1 = (0.1 * jax.random.normal(ks[8], (D, Hh))).astype(jnp.float32)
    b1 = jnp.zeros((Hh,), jnp.float32)
    W2 = (0.1 * jax.random.normal(ks[9], (Hh, 1))).astype(jnp.float32)
    b2 = jnp.zeros((1,), jnp.float32)
    params = (W1, b1, W2, b2)

    out = sred_rep_rho_forward(phi, w_M, y_M, G_M, H_M, params, constants)
    jax.block_until_ready(out)

    ref_s, ref_rho = reference_forward(phi, w_M, y_M, G_M, H_M, params, constants)
    np.testing.assert_allclose(np.asarray(out['s_stack_batch']),
                               np.asarray(ref_s), rtol=1e-3, atol=1e-3)
    np.testing.assert_allclose(np.asarray(out['rho_M_stack_batch']),
                               np.asarray(ref_rho), rtol=1e-3, atol=1e-3)
    print("KERNEL_OK")
</pallas_src>

<mosaic_0001>
module attributes {stable_mosaic.version = 11 : i64} {
  func.func @_sred_kernel(%arg0: i32, %arg1: memref<2x8xf32, #tpu.memory_space<vmem>>, %arg2: memref<4x2x32xf32, #tpu.memory_space<vmem>>, %arg3: memref<4x2x8x32xf32, #tpu.memory_space<vmem>>, %arg4: memref<16x32xf32, #tpu.memory_space<vmem>>, %arg5: memref<32x1xf32, #tpu.memory_space<vmem>>, %arg6: memref<1x1xf32, #tpu.memory_space<vmem>>, %arg7: memref<1x2x8xf32, #tpu.memory_space<vmem>>, %arg8: memref<2x8xf32, #tpu.memory_space<vmem>>, %arg9: memref<1x4x2xf32, #tpu.memory_space<vmem>>, %arg10: memref<2x8xf32, #tpu.memory_space<vmem>>) attributes {dimension_semantics = [#tpu.dimension_semantics<arbitrary>], iteration_bounds = array<i64: 3>, scalar_prefetch = 0 : i64, scratch_operands = 1 : i64, tpu.core_type = #tpu.core_type<tc>, window_params = [{pipeline_mode = #tpu.pipeline_mode<synchronous>, transform_indices = @transform_0, window_bounds = array<i64: 2, 8>}, {pipeline_mode = #tpu.pipeline_mode<synchronous>, transform_indices = @transform_1, window_bounds = array<i64: 4, 2, 32>}, {pipeline_mode = #tpu.pipeline_mode<synchronous>, transform_indices = @transform_2, window_bounds = array<i64: 4, 2, 8, 32>}, {pipeline_mode = #tpu.pipeline_mode<synchronous>, transform_indices = @transform_3, window_bounds = array<i64: 16, 32>}, {pipeline_mode = #tpu.pipeline_mode<synchronous>, transform_indices = @transform_4, window_bounds = array<i64: 32, 1>}, {pipeline_mode = #tpu.pipeline_mode<synchronous>, transform_indices = @transform_5, window_bounds = array<i64: 1, 1>}, {transform_indices = @transform_6, window_bounds = array<i64: 1, 2, 8>}, {pipeline_mode = #tpu.pipeline_mode<synchronous>, transform_indices = @transform_7, window_bounds = array<i64: 2, 8>}, {transform_indices = @transform_8, window_bounds = array<i64: 1, 4, 2>}]} {
    %c0_i32 = arith.constant 0 : i32
    %0 = arith.cmpi eq, %arg0, %c0_i32 : i32
    %1 = arith.extui %0 : i1 to i32
    %c0_i32_0 = arith.constant 0 : i32
    %2 = arith.cmpi ne, %1, %c0_i32_0 : i32
    scf.if %2 {
      %c0_35 = arith.constant 0 : index
      %c0_36 = arith.constant 0 : index
      %66 = vector.load %arg1[%c0_35, %c0_36] : memref<2x8xf32, #tpu.memory_space<vmem>>, vector<2x8xf32>
      %c0_37 = arith.constant 0 : index
      %c0_38 = arith.constant 0 : index
      %67 = vector.load %arg10[%c0_37, %c0_38] : memref<2x8xf32, #tpu.memory_space<vmem>>, vector<2x8xf32>
      tpu.vector_store %arg10[%c0_37, %c0_38], %66 {strides = array<i32>} : memref<2x8xf32, #tpu.memory_space<vmem>>, vector<2x8xf32>,
    } else {
    }
    %c0 = arith.constant 0 : index
    %c0_1 = arith.constant 0 : index
    %3 = vector.load %arg10[%c0, %c0_1] : memref<2x8xf32, #tpu.memory_space<vmem>>, vector<2x8xf32>
    %c0_2 = arith.constant 0 : index
    %c0_3 = arith.constant 0 : index
    %c0_4 = arith.constant 0 : index
    %4 = vector.load %arg7[%c0_2, %c0_3, %c0_4] : memref<1x2x8xf32, #tpu.memory_space<vmem>>, vector<1x2x8xf32>
    %5 = vector.shape_cast %4 : vector<1x2x8xf32> to vector<2x8xf32>
    %6 = vector.shape_cast %3 : vector<2x8xf32> to vector<1x2x8xf32>
    tpu.vector_store %arg7[%c0_2, %c0_3, %c0_4], %6 {strides = array<i32>} : memref<1x2x8xf32, #tpu.memory_space<vmem>>, vector<1x2x8xf32>,
    %7 = math.cos %3 : vector<2x8xf32>
    %cst = arith.constant 1.000000e+00 : f32
    %8 = vector.broadcast %cst : f32 to vector<2x8xf32>
    %9 = arith.mulf %8, %7 : vector<2x8xf32>
    %10 = math.sin %3 : vector<2x8xf32>
    %cst_5 = arith.constant 1.000000e+00 : f32
    %11 = vector.broadcast %cst_5 : f32 to vector<2x8xf32>
    %12 = arith.mulf %11, %10 : vector<2x8xf32>
    %13 = tpu.concatenate %9, %12 in 1 : vector<2x8xf32>, vector<2x8xf32> -> vector<2x16xf32>
    %c0_6 = arith.constant 0 : index
    %c0_7 = arith.constant 0 : index
    %14 = vector.load %arg4[%c0_6, %c0_7] : memref<16x32xf32, #tpu.memory_space<vmem>>, vector<16x32xf32>
    %cst_8 = arith.constant dense<0.000000e+00> : vector<2x32xf32>
    %15 = tpu.matmul %13, %14, %cst_8 {dimension_numbers = #tpu.dot_dimension_numbers<[1], [0], [0], [1], [0, 0, 1, 1], [], []>} : vector<2x16xf32>, vector<16x32xf32>, vector<2x32xf32> -> vector<2x32xf32>
    %16 = vector.shape_cast %15 : vector<2x32xf32> to vector<1x2x32xf32>
    %c0_9 = arith.constant 0 : index
    %c0_10 = arith.constant 0 : index
    %c0_11 = arith.constant 0 : index
    %17 = vector.load %arg2[%c0_9, %c0_10, %c0_11] : memref<4x2x32xf32, #tpu.memory_space<vmem>>, vector<4x2x32xf32>
    %18 = vector.broadcast %16 : vector<1x2x32xf32> to vector<4x2x32xf32>
    %19 = arith.addf %18, %17 : vector<4x2x32xf32>
    %cst_12 = arith.constant 0.000000e+00 : f32
    %20 = vector.broadcast %cst_12 : f32 to vector<4x2x32xf32>
    %21 = arith.maximumf %19, %20 : vector<4x2x32xf32>
    %c0_13 = arith.constant 0 : index
    %c0_14 = arith.constant 0 : index
    %22 = vector.load %arg5[%c0_13, %c0_14] : memref<32x1xf32, #tpu.memory_space<vmem>>, vector<32x1xf32>
    "tpu.trace_start"() <{level = 10 : i32, message = "mbh,ho->mbo"}> : () -> ()
    %cst_15 = arith.constant dense<0.000000e+00> : vector<4x2x1xf32>
    %23 = tpu.matmul %21, %22, %cst_15 {dimension_numbers = #tpu.dot_dimension_numbers<[2], [0], [0, 1], [1], [0, 0, 0, 1, 1, 1], [], []>} : vector<4x2x32xf32>, vector<32x1xf32>, vector<4x2x1xf32> -> vector<4x2x1xf32>
    "tpu.trace_stop"() : () -> ()
    %c0_16 = arith.constant 0 : index
    %c0_17 = arith.constant 0 : index
    %24 = vector.load %arg6[%c0_16, %c0_17] : memref<1x1xf32, #tpu.memory_space<vmem>>, vector<1x1xf32>
    %25 = vector.shape_cast %24 : vector<1x1xf32> to vector<1x1x1xf32>
    %26 = vector.broadcast %25 : vector<1x1x1xf32> to vector<4x2x1xf32>
    %27 = arith.addf %23, %26 : vector<4x2x1xf32>
    %cst_18 = arith.constant 0.000000e+00 : f32
    %28 = vector.broadcast %cst_18 : f32 to vector<4x2x1xf32>
    %29 = arith.subf %28, %27 : vector<4x2x1xf32>
    %30 = math.exp %29 : vector<4x2x1xf32>
    %cst_19 = arith.constant 1.000000e+00 : f32
    %31 = vector.broadcast %cst_19 : f32 to vector<4x2x1xf32>
    %32 = arith.addf %31, %30 : vector<4x2x1xf32>
    %cst_20 = arith.constant 1.000000e+00 : f32
    %33 = vector.broadcast %cst_20 : f32 to vector<4x2x1xf32>
    %34 = arith.divf %33, %32 : vector<4x2x1xf32>
    %35 = vector.shape_cast %34 : vector<4x2x1xf32> to vector<4x2xf32>
    %c0_21 = arith.constant 0 : index
    %c0_22 = arith.constant 0 : index
    %c0_23 = arith.constant 0 : index
    %36 = vector.load %arg9[%c0_21, %c0_22, %c0_23] : memref<1x4x2xf32, #tpu.memory_space<vmem>>, vector<1x4x2xf32>
    %37 = vector.shape_cast %36 : vector<1x4x2xf32> to vector<4x2xf32>
    %38 = vector.shape_cast %35 : vector<4x2xf32> to vector<1x4x2xf32>
    tpu.vector_store %arg9[%c0_21, %c0_22, %c0_23], %38 {strides = array<i32>} : memref<1x4x2xf32, #tpu.memory_space<vmem>>, vector<1x4x2xf32>,
    %c0_24 = arith.constant 0 : index
    %c0_25 = arith.constant 0 : index
    %c0_26 = arith.constant 0 : index
    %c0_27 = arith.constant 0 : index
    %39 = vector.load %arg3[%c0_24, %c0_25, %c0_26, %c0_27] : memref<4x2x8x32xf32, #tpu.memory_space<vmem>>, vector<4x2x8x32xf32>
    %40 = vector.shape_cast %13 : vector<2x16xf32> to vector<1x2x1x16xf32>
    %41 = vector.extract_strided_slice %39 {offsets = [0, 0, 0, 0], sizes = [4, 2, 8, 16], strides = [1, 1, 1, 1]} : vector<4x2x8x32xf32> to vector<4x2x8x16xf32>
    %42 = vector.broadcast %40 : vector<1x2x1x16xf32> to vector<4x2x8x16xf32>
    %43 = arith.mulf %41, %42 : vector<4x2x8x16xf32>
    %cst_28 = arith.constant dense<0.000000e+00> : vector<4x2x8xf32>
    %44 = vector.multi_reduction <add>, %43, %cst_28 [3] : vector<4x2x8x16xf32> to vector<4x2x8xf32>
    %45 = vector.extract_strided_slice %39 {offsets = [0, 0, 0, 16], sizes = [4, 2, 8, 16], strides = [1, 1, 1, 1]} : vector<4x2x8x32xf32> to vector<4x2x8x16xf32>
    %46 = vector.broadcast %40 : vector<1x2x1x16xf32> to vector<4x2x8x16xf32>
    %47 = arith.mulf %45, %46 : vector<4x2x8x16xf32>
    %cst_29 = arith.constant dense<0.000000e+00> : vector<4x2x8xf32>
    %48 = vector.multi_reduction <add>, %47, %cst_29 [3] : vector<4x2x8x16xf32> to vector<4x2x8xf32>
    %49 = vector.shape_cast %9 : vector<2x8xf32> to vector<1x2x8xf32>
    %50 = vector.broadcast %49 : vector<1x2x8xf32> to vector<4x2x8xf32>
    %51 = arith.mulf %50, %48 : vector<4x2x8xf32>
    %52 = vector.shape_cast %12 : vector<2x8xf32> to vector<1x2x8xf32>
    %53 = vector.broadcast %52 : vector<1x2x8xf32> to vector<4x2x8xf32>
    %54 = arith.mulf %53, %44 : vector<4x2x8xf32>
    %55 = arith.subf %51, %54 : vector<4x2x8xf32>
    %56 = vector.broadcast %34 : vector<4x2x1xf32> to vector<4x2x8xf32>
    %57 = arith.mulf %56, %55 : vector<4x2x8xf32>
    %cst_30 = arith.constant dense<0.000000e+00> : vector<2x8xf32>
    %58 = vector.multi_reduction <add>, %57, %cst_30 [0] : vector<4x2x8xf32> to vector<2x8xf32>
    %59 = vector.extract_strided_slice %34 {offsets = [3, 0, 0], sizes = [1, 2, 1], strides = [1, 1, 1]} : vector<4x2x1xf32> to vector<1x2x1xf32>
    %60 = vector.shape_cast %59 : vector<1x2x1xf32> to vector<2x1xf32>
    %61 = vector.broadcast %60 : vector<2x1xf32> to vector<2x8xf32>
    %62 = arith.mulf %61, %58 : vector<2x8xf32>
    %63 = arith.subf %3, %62 : vector<2x8xf32>
    %c0_31 = arith.constant 0 : index
    %c0_32 = arith.constant 0 : index
    %64 = vector.load %arg10[%c0_31, %c0_32] : memref<2x8xf32, #tpu.memory_space<vmem>>, vector<2x8xf32>
    tpu.vector_store %arg10[%c0_31, %c0_32], %63 {strides = array<i32>} : memref<2x8xf32, #tpu.memory_space<vmem>>, vector<2x8xf32>,
    %c0_33 = arith.constant 0 : index
    %c0_34 = arith.constant 0 : index
    %65 = vector.load %arg8[%c0_33, %c0_34] : memref<2x8xf32, #tpu.memory_space<vmem>>, vector<2x8xf32>
    tpu.vector_store %arg8[%c0_33, %c0_34], %63 {strides = array<i32>} : memref<2x8xf32, #tpu.memory_space<vmem>>, vector<2x8xf32>,
    return
  }
  func.func @transform_0(%arg0: i32) -> (i32, i32) {
    %c0_i32 = arith.constant 0 : i32
    %c0_i32_0 = arith.constant 0 : i32
    %c0_i32_1 = arith.constant 0 : i32
    return %c0_i32, %c0_i32_0 : i32, i32
  }
  func.func @transform_1(%arg0: i32) -> (i32, i32, i32) {
    %c0_i32 = arith.constant 0 : i32
    %c0_i32_0 = arith.constant 0 : i32
    %c0_i32_1 = arith.constant 0 : i32
    %c0_i32_2 = arith.constant 0 : i32
    return %c0_i32, %c0_i32_0, %c0_i32_1 : i32, i32, i32
  }
  func.func @transform_2(%arg0: i32) -> (i32, i32, i32, i32) {
    %c0_i32 = arith.constant 0 : i32
    %c0_i32_0 = arith.constant 0 : i32
    %c0_i32_1 = arith.constant 0 : i32
    %c0_i32_2 = arith.constant 0 : i32
    %c0_i32_3 = arith.constant 0 : i32
    return %c0_i32, %c0_i32_0, %c0_i32_1, %c0_i32_2 : i32, i32, i32, i32
  }
  func.func @transform_3(%arg0: i32) -> (i32, i32) {
    %c0_i32 = arith.constant 0 : i32
    %c0_i32_0 = arith.constant 0 : i32
    %c0_i32_1 = arith.constant 0 : i32
    return %c0_i32, %c0_i32_0 : i32, i32
  }
  func.func @transform_4(%arg0: i32) -> (i32, i32) {
    %c0_i32 = arith.constant 0 : i32
    %c0_i32_0 = arith.constant 0 : i32
    %c0_i32_1 = arith.constant 0 : i32
    return %c0_i32, %c0_i32_0 : i32, i32
  }
  func.func @transform_5(%arg0: i32) -> (i32, i32) {
    %c0_i32 = arith.constant 0 : i32
    %c0_i32_0 = arith.constant 0 : i32
    %c0_i32_1 = arith.constant 0 : i32
    return %c0_i32, %c0_i32_0 : i32, i32
  }
  func.func @transform_6(%arg0: i32) -> (i32, i32, i32) {
    %c0_i32 = arith.constant 0 : i32
    %c0_i32_0 = arith.constant 0 : i32
    %c0_i32_1 = arith.constant 0 : i32
    return %arg0, %c0_i32, %c0_i32_0 : i32, i32, i32
  }
  func.func @transform_7(%arg0: i32) -> (i32, i32) {
    %c0_i32 = arith.constant 0 : i32
    %c0_i32_0 = arith.constant 0 : i32
    %c0_i32_1 = arith.constant 0 : i32
    return %c0_i32, %c0_i32_0 : i32, i32
  }
  func.func @transform_8(%arg0: i32) -> (i32, i32, i32) {
    %c0_i32 = arith.constant 0 : i32
    %c0_i32_0 = arith.constant 0 : i32
    %c0_i32_1 = arith.constant 0 : i32
    return %arg0, %c0_i32, %c0_i32_0 : i32, i32, i32
  }
}

</mosaic_0001>

<bundles_post_ra>
// kernel: tpu_custom_call.1
= control target key start
LH: loop header
LB: loop body
LE: loop exit
PB: predicated region body
PF: predicated region fallthrough
CT: control target
= control target key end

     0   :  { %s1959_s0 = inlined_call_operand.vmem [shape: f32[2,8], index: 0, kind: input, shape index: {}]   ;;  %s1960_s1 = inlined_call_operand.vmem [shape: f32[4,2,32], index: 1, kind: input, shape index: {}]   ;;  %s1961_s2 = inlined_call_operand.hbm [shape: f32[4,2,8,32], index: 2, kind: input, shape index: {}]   ;;  %s1962_s3 = inlined_call_operand.vmem [shape: f32[16,32], index: 3, kind: input, shape index: {}]   ;;  %s1963_s4 = inlined_call_operand.vmem [shape: f32[32,1], index: 4, kind: input, shape index: {}]   ;;  %s1964_s5 = inlined_call_operand.<no memory space> [shape: f32[1,1], index: 5, kind: input, shape index: {}]   ;;  %s1965_s6 = inlined_call_operand.hbm [shape: f32[3,2,8], index: 6, kind: output, shape index: {0}]   ;;  %s1966_s7 = inlined_call_operand.hbm [shape: f32[2,8], index: 7, kind: output, shape index: {1}]   ;;  %s1967_s8 = inlined_call_operand.vmem [shape: f32[3,4,2], index: 8, kind: output, shape index: {2}]  }
   0x1   :  { %v14_v0 = vstv %s1964_s5 }
   0x2   :  { %15 = vst [vmem:[#allocation3] sm:$0x1] %v14_v0 }
   0x3   :  { %16 = vsyncpa [#allocation5], 0 }
   0x4   :  { %17 = vsyncpa [#allocation6], 0 }
   0x5   :  { %19 = vsyncpa [#allocation6 + $0x1], 0 }
   0x6   :  { %20 = vsyncpa [#allocation9], 0  ;;  %s1626_s29 = smov 0   ;;  %s1628_s30 = smov 0  }
   0x7   :  { %s1630_s9 = smov 0   ;;  %s1632_s10 = smov 0  }
   0x8 LB: > { %s1647_s5 = sadd.s32 4294967295, %s1556_s10   ;;  %s1287_s11 = sadd.s32 4294967294, %s1556_s10   ;;  %s1556_s10 = sphi %s1632_s10, %s1981_s10   ;;  %s1552_s9 = sphi %s1630_s9, %s1980_s9   ;;  %s1548_s30 = sphi %s1628_s30, %s1979_s30   ;;  %s1544_s29 = sphi %s1626_s29, %s1978_s29  }
   0x9   : > { %s1651_s12 = sadd.s32 1, %s1556_s10   ;;  %s159_s13 = sadd.s32 1, %s1552_s9 }
   0xa   : > { %s156_s14 = ssub.s32 %s1556_s10, %s1651_s12  ;;  %p169_p0 = scmp.ne.s32.totalorder %s1552_s9, %s1548_s30 }
   0xb   : > { %p157_p1 = scmp.eq.s32.totalorder %s156_s14, 0  ;;  %p1968_p2 = scmp.eq.s32.totalorder %s1647_s5, 2 }
   0xc   : > { %p175_p3 = scmp.ne.s32.totalorder %s1548_s30, %s1544_s29  ;;  %p176_p4 = scmp.eq.s32.totalorder %s1287_s11, 2 }
   0xd   : > { %s1662_s15 = scalar_select %p157_p1, %s1552_s9, %s159_s13  }
   0xe   : > { %p1666_p5 = por %p1968_p2, %p169_p0  ;;  %p1670_p6 = por %p176_p4, %p175_p3 }
   0xf   : > { %p1288_p7 = scmp.ge.s32.totalorder %s1556_s10, 1  ;;  %p230_p8 = scmp.lt.s32.totalorder %s1556_s10, 4 }
  0x10   : > { %s1970_s17 = scalar_select %p1670_p6, 1, 0 }
  0x11   : > { %p1360_p10 = scmp.eq.s32.totalorder %s1647_s5, 0  ;;  %p1678_p11 = pnand %p1288_p7, %p230_p8 }
  0x12   : > { %s1558_s19 = smov [#allocation4]  }
  0x13   : > { %s248_s20 = sshll.u32 %s1558_s19, 4  ;;  %p1352_p12 = pneg %p1678_p11  ;;  %s249_s20 = int_to_ptr.vmem [resolvable:$true] %s248_s20 }
  0x14   : > { %s1449_s21 = scalar_lea.vmem %s249_s20, 1024  ;;  %p1457_p2 = scmp.lt.s32.totalorder %s249_s20, %s249_s20 }
  0x15   : > { %p1353_p13 = pnand %p1360_p10, %p1352_p12  ;;  %p1450_p1 = scmp.ne.s32.totalorder %s249_s20, %s1449_s21 }
  0x16   : > { %p1458_p9 = scmp.lt.s32.totalorder %s1449_s21, %s1449_s21 }
  0x17   : > { %p1440_p0 = pneg %p1353_p13 }
  0x18   : > { %p1459_p6 = por %p1458_p9, %p1457_p2 }
  0x19   : > { %p1452_p3 = pnand %p1450_p1, %p1440_p0 }
  0x1b   : > { %p1453_p4 = pneg %p1452_p3 }
  0x1d   : > { %p1460_p7 = pnand %p1459_p6, %p1453_p4 }
  0x1f   : > { %1463 = shalt.err (!%p1460_p7)
}
  0x20   : > { %s1559_s22 = smov 128   ;;  %s1560_s23 = smov 8  }
  0x21   : > { %1355 = dma.hbm_to_vmem [thread:$0]  (!%p1353_p13), %s1961_s2, 1024, %s249_s20, [#allocation5], %s1559_s22, %s1559_s22, %s1560_s23  }
  0x22   : > { %273 = sbr.rel (%p1678_p11) target bundleno = 855 (0x357), region = 44 }
  0x27   : > { %1531 = dma.done.wait (%p1360_p10), [#allocation5], 1024  }
  0x28   : > { %1533 = vsyncadd (%p1360_p10), [#allocation5], 4294966272  ;;  %s295_s26 = sand.u32 1, %s1548_s30   ;;  %p306_p2 = scmp.lt.s32.totalorder %s1647_s5, 2 }
  0x29   : > { %s1699_s27 = sshll.u32 %s295_s26, 1  ;;  %p1972_p6 = scmp.ne.s32.totalorder %s1647_s5, 0 }
  0x2a   : > { %s307_s28 = scalar_select %p306_p2, %s1647_s5, 2 }
  0x2b   : > { %s297_s19 = scalar_lea.vmem [#allocation7], %s1699_s27  ;;  %313 = sbr.rel (%p1972_p6) target bundleno = 50 (0x32), region = 52 }
  0x2c   : > { %s1293_s11 = sshll.u32 %s307_s28, 2 }
  0x2d   : > { %s1705_s18 = scalar_lea.vmem %s1967_s8, %s1293_s11 }
  0x30   : > { %v314_v1 = vld [vmem:[%s1959_s0] sm:$0x3]  ;;  %vm315_vm0 = vcmask 58368  }
  0x31   : > { %316 = vst.msk [vmem:[#allocation2] sm:$0x3] %vm315_vm0, %v314_v1 }
  0x32 PF: > { %v534_v6 = vld [vmem:[%s1962_s3 + $0x8] sm:$0xff]  ;;  %v1561_v8 = vmov 0.0   ;;  %v1562_v16 = vmov 683565275   ;;  %v1563_v18 = vmov 2475754826  }
  0x33   : > { %1320 = vmatprep.subr.mxu0 %v1561_v8  ;;  %1327 = vmatprep.subr.mxu1 %v1561_v8  ;;  %v1564_v20 = vmov 2131351028   ;;  %v1565_v22 = vmov 2102212464   ;;  %v1566_v24 = vmov 920167782  }
  0x34   : > { %1321 = vmatpush3.msra.mxu0 %v534_v6  ;;  %v1567_v31 = vmov 1326507024   ;;  %vm1568_vm10 = vmmov 0   ;;  %s1569_s28 = smov 8   ;;  %s1571_s11 = smov 16  }
  0x35   : > { %1322 = vmatprep.subr.mxu0 %v1561_v8  ;;  %1324 = vmatprep.mubr.msk.f32.mxu0 %vm1568_vm10, %v1561_v8  ;;  %s1307_s25 = sshll.u32 %s1647_s5, 5  ;;  %s1179_s14 = sshll.u32 %s297_s19, 4  ;;  %s1180_s14 = int_to_ptr.vmem [resolvable:$true] %s1179_s14 }
  0x36   : > { %1335 = vmatprep.mubr.msk.f32.mxu1 %vm1568_vm10, %v1561_v8  ;;  %s1177_s13 = scalar_lea.hbm %s1965_s6, %s1307_s25  ;;  %s1162_s20 = scalar_lea.sflag [#allocation6], %s295_s26 }
  0x37   : > { %s1464_s21 = scalar_lea.vmem %s1180_s14, 32  ;;  %s1575_s22 = smov [#allocation7]  }
  0x38   : > { %v1713_v2 = vld [vmem:[#allocation2] sm:$0x3]  ;;  %p1465_p8 = scmp.ne.s32.totalorder %s1180_s14, %s1464_s21  ;;  %s1468_s23 = sshll.u32 %s1575_s22, 4  ;;  %s1469_s23 = int_to_ptr.vmem [resolvable:$false] %s1468_s23 }
  0x39   : > { %v323_v3 = vand.u32 2139095040, %v1713_v2  ;;  %v320_v5 = vand.u32 2147483647, %v1713_v2  ;;  %vm322_vm8 = vcmp.lt.s32.totalorder %v1713_v2, 0  ;;  %s1470_s24 = scalar_lea.vmem %s1469_s23, 64  ;;  %p1471_p11 = scmp.lt.s32.totalorder %s1180_s14, %s1469_s23 }
  0x3a   : > { %p1466_p9 = pnand %p1465_p8, %p1666_p5  ;;  %p1472_p12 = scmp.lt.s32.totalorder %s1470_s24, %s1464_s21 }
  0x3b   : > { %v324_v4 = vshrl.u32 %v323_v3, 23  ;;  %v327_v10 = vand.u32 8388607, %v320_v5  ;;  %vm321_vm9 = vcmp.le.f32.partialorder %v320_v5, 0.7853982 }
  0x3c   : > { %p1467_p10 = pneg %p1466_p9  ;;  %p1473_p13 = por %p1472_p12, %p1471_p11 }
  0x3d   : > { %v1295_v7 = vadd.s32 4294967169, %v324_v4  ;;  %v328_v13 = vor.u32 8388608, %v327_v10 }
  0x3e   : > { %p1474_p0 = pnand %p1473_p13, %p1467_p10 }
  0x3f   : > { %v330_v9 = vadd.s32 1, %v1295_v7  ;;  %v368_v33 = vshll.u32 %v328_v13, 8 }
  0x41   : > { %vm331_vm1 = vcmp.gt.s32.totalorder %v330_v9, 0 }
  0x42   : > { %v332_v11 = vsel %vm331_vm1, %v330_v9, 0  ;;  %vm412_vm1 = vweird.f32 %v1713_v2 }
  0x43   : > { %v334_v12 = vand.u32 31, %v332_v11  ;;  %v333_v14 = vshrl.u32 %v332_v11, 5 }
  0x45   : > { %v335_v15 = vsub.s32 32, %v334_v12  ;;  %v337_v17 = vshll.u32 %v1562_v16, %v334_v12  ;;  %v340_v19 = vshll.u32 %v1563_v18, %v334_v12  ;;  %v343_v21 = vshll.u32 %v1564_v20, %v334_v12 }
  0x46   : > { %v346_v23 = vshll.u32 %v1565_v22, %v334_v12  ;;  %v349_v25 = vshll.u32 %v1566_v24, %v334_v12  ;;  %vm352_vm2 = vcmp.lt.s32.totalorder %v333_v14, 1  ;;  %vm355_vm3 = vcmp.lt.s32.totalorder %v333_v14, 4 }
  0x47   : > { %v336_v26 = vshrl.u32 %v1562_v16, %v335_v15  ;;  %v338_v27 = vshrl.u32 %v1563_v18, %v335_v15  ;;  %v341_v28 = vshrl.u32 %v1564_v20, %v335_v15  ;;  %v344_v29 = vshrl.u32 %v1565_v22, %v335_v15 }
  0x48   : > { %v347_v30 = vshrl.u32 %v1566_v24, %v335_v15  ;;  %v350_v32 = vshrl.u32 %v1567_v31, %v335_v15  ;;  %vm353_vm4 = vcmp.lt.s32.totalorder %v333_v14, 2  ;;  %vm354_vm5 = vcmp.lt.s32.totalorder %v333_v14, 3 }
  0x49   : > { %v339_v34 = vor.u32 %v338_v27, %v337_v17  ;;  %v342_v35 = vor.u32 %v341_v28, %v340_v19  ;;  %v345_v36 = vor.u32 %v344_v29, %v343_v21 }
  0x4a   : > { %v348_v37 = vor.u32 %v347_v30, %v346_v23  ;;  %v351_v38 = vor.u32 %v350_v32, %v349_v25 }
  0x4b   : > { %v356_v39 = vsel %vm352_vm2, %v336_v26, %v339_v34  ;;  %v357_v40 = vsel %vm355_vm3, %v345_v36, 2102212464  ;;  %v360_v41 = vsel %vm352_vm2, %v339_v34, %v342_v35  ;;  %v364_v42 = vsel %vm352_vm2, %v342_v35, %v345_v36  ;;  %v533_v26 = vld [vmem:[%s1962_s3] sm:$0xff] }
  0x4c   : > { %v358_v43 = vsel %vm354_vm5, %v342_v35, %v357_v40  ;;  %v361_v44 = vsel %vm355_vm3, %v348_v37, 920167782  ;;  %v365_v45 = vsel %vm355_vm3, %v351_v38, 1326507024  ;;  %1323 = vmatpush3.msra.mxu0 %v533_v26  ;;  %v640_v40 = vlaneseq }
  0x4d   : > { %v362_v46 = vsel %vm354_vm5, %v345_v36, %v361_v44  ;;  %v366_v47 = vsel %vm354_vm5, %v348_v37, %v365_v45  ;;  %v359_v48 = vsel %vm353_vm4, %v356_v39, %v358_v43  ;;  %vm531_vm2 = vcmask 64512  }
  0x4e   : > { %v363_v49 = vsel %vm353_vm4, %v360_v41, %v362_v46  ;;  %v367_v50 = vsel %vm353_vm4, %v364_v42, %v366_v47  ;;  %v375_v55 = vmul.u32 %v368_v33, %v359_v48  ;;  %v1570_v41 = vmov 1966171168  }
  0x4f   : > { %v1725_v51 = vmul.u32.u64.low %v368_v33, %v367_v50  ;;  %v1726_v52 = vmul.u32.u64.high %v368_v33, %v367_v50, %v1725_v51  ;;  %v1728_v53 = vmul.u32.u64.low %v368_v33, %v363_v49  ;;  %v1729_v54 = vmul.u32.u64.high %v368_v33, %v363_v49, %v1728_v53 }
  0x50   : > { %v861_v42 = vunpack.c.l.s4 %v1570_v41  ;;  %v1751_v43 = vshrl.u32 %v640_v40, 7  ;;  %vm535_vm3 = vcmask 130048   ;;  %vm843_vm4 = vcmask 1041409  }
  0x51   : > { %vm377_vm6 = vc.u32 %v1726_v52, %v1728_v53  ;;  %v378_v56 = vadd.s32 1, %v1729_v54  ;;  %v376_v4 = vadd.s32 %v1728_v53, %v1726_v52  ;;  %vm662_vm5 = vcmask 261120  }
  0x52   : > { %v862_v44 = vunpack.c.0.s8 %v861_v42  ;;  %v884_v48 = vsub.s32 0, %v1751_v43 }
  0x53   : > { %v379_v57 = vsel %vm377_vm6, %v378_v56, %v1729_v54  ;;  %vm318_vm6 = vcmask 58368  }
  0x54   : > { %v380_v58 = vadd.s32 %v379_v57, %v375_v55  ;;  %v865_v45 = vsub.s32 %v862_v44, %v1751_v43  ;;  %v852_v55 = vld [vmem:[#allocation4] sm:$0xff]  ;;  %v854_v57 = vld [vmem:[#allocation4 + $0x10] sm:$0xff]  ;;  %319 = vst.msk [vmem:[%s297_s19] sm:$0x3] %vm318_vm6, %v1713_v2 }
  0x56   : > { %v381_v59 = vadd.s32 536870912, %v380_v58 }
  0x58   : > { %v382_v60 = vshrl.u32 %v381_v59, 30 }
  0x5a   : > { %v383_v61 = vshll.u32 %v382_v60, 30  ;;  %v406_v19 = vsub.s32 4, %v382_v60 }
  0x5c   : > { %v384_v62 = vsub.s32 %v380_v58, %v383_v61  ;;  %v407_v22 = vsel %vm322_vm8, %v406_v19, %v382_v60  ;;  %v856_v60 = vld [vmem:[#allocation4 + $0x20] sm:$0xff]  ;;  %v855_v61 = vld [vmem:[#allocation4 + $0x18] sm:$0xff]  ;;  %v623_v19 = vld [vmem:[%s1963_s4 + $0x10] sm:$0xff] }
  0x5d   : > { %v409_v24 = vsel %vm321_vm9, 0, %v407_v22 }
  0x5e   : > { %v386_v63 = vsub.s32 0, %v384_v62  ;;  %v516_v25 = vadd.s32 3, %v409_v24  ;;  %v413_v5 = vand.u32 3, %v409_v24 }
  0x60   : > { %v1296_v0 = vmin.u32 %v386_v63, %v384_v62  ;;  %v517_v27 = vand.u32 3, %v516_v25  ;;  %vm418_vm11 = vcmp.eq.s32.totalorder %v413_v5, 2  ;;  %vm415_vm13 = vcmp.eq.s32.totalorder %v413_v5, 0 }
  0x61   : > { %vm414_vm15 = vcmp.lt.s32.totalorder %v413_v5, 2 }
  0x62   : > { %v388_v1 = vclz %v1296_v0  ;;  %vm522_vm12 = vcmp.eq.s32.totalorder %v517_v27, 2  ;;  %vm519_vm14 = vcmp.eq.s32.totalorder %v517_v27, 0  ;;  %vm518_vm0 = vcmp.lt.s32.totalorder %v517_v27, 2 }
  0x64   : > { %v1297_v3 = vadd.s32 4294967294, %v388_v1  ;;  %v858_v1 = vld [vmem:[#allocation4 + $0x30] sm:$0xff] }
  0x66   : > { %vm1298_vm7 = vcmp.lt.s32.totalorder %v1297_v3, 0 }
  0x67   : > { %v391_v6 = vsel %vm1298_vm7, 0, %v1297_v3  ;;  %v857_v3 = vld [vmem:[#allocation4 + $0x28] sm:$0xff] }
  0x68   : > { %v392_v7 = vsub.s32 32, %v391_v6  ;;  %v393_v9 = vshll.u32 %v384_v62, %v391_v6  ;;  %v396_v10 = vsub.s32 4294967266, %v391_v6 }
  0x6a   : > { %v394_v11 = vshrl.u32 %v376_v4, %v392_v7  ;;  %v397_v12 = vadd.s32 127, %v396_v10  ;;  %v853_v10 = vld [vmem:[#allocation4 + $0x8] sm:$0xff] }
  0x6c   : > { %v395_v13 = vor.u32 %v394_v11, %v393_v9  ;;  %v398_v14 = vshll.u32 %v397_v12, 23  ;;  %v859_v11 = vld [vmem:[#allocation4 + $0x38] sm:$0xff] }
  0x6e   : > { %v399_v15 = vor.u32 4788187, %v398_v14  ;;  %v402_v16 = vcvt.s32.f32 %v395_v13 }
  0x70   : > { %v400_v17 = vand.u32 2147483647, %v399_v15 }
  0x72   : > { %v403_v18 = vmul.f32 %v402_v16, %v400_v17 }
  0x74   : > { %v404_v20 = vxor.u32 2147483648, %v403_v18 }
  0x76   : > { %v405_v21 = vsel %vm322_vm8, %v404_v20, %v403_v18  ;;  %v624_v18 = vld [vmem:[%s1963_s4 + $0x18] sm:$0xff]  ;;  %v622_v20 = vld [vmem:[%s1963_s4 + $0x8] sm:$0xff] }
  0x77   : > { %v408_v23 = vsel %vm321_vm9, %v1713_v2, %v405_v21  ;;  %1328 = vmatpush3.msra.mxu1 %v624_v18  ;;  %v621_v21 = vld [vmem:[%s1963_s4] sm:$0xff] }
  0x78   : > { %1418 = vcosq.f32 %v408_v23  ;;  %1329 = vmatprep.subr.mxu1 %v1561_v8 }
  0x79   : > { %1420 = vsinq.f32 %v408_v23  ;;  %1330 = vmatpush3.msra.mxu1 %v623_v19 }
  0x7a   : > { %1331 = vmatprep.subr.mxu1 %v1561_v8 }
  0x7b   : > { %1332 = vmatpush3.msra.mxu1 %v622_v20 }
  0x7c   : > { %1333 = vmatprep.subr.mxu1 %v1561_v8  ;;  %v826_v8 = vand.u32 127, %v640_v40 }
  0x7d   : > { %1334 = vmatpush3.msra.mxu1 %v621_v21 }
  0x85   : > { %v1419_v28 = vpop.eup %1418 }
  0x86   : > { %v1421_v29 = vpop.eup %1420  ;;  %v419_v30 = vxor.u32 2147483648, %v1419_v28 }
  0x87   : > { %v416_v31 = vxor.u32 2147483648, %v1421_v29 }
  0x88   : > { %v524_v32 = vsel %vm522_vm12, %v419_v30, %v1421_v29  ;;  %v420_v33 = vsel %vm418_vm11, %v419_v30, %v1421_v29 }
  0x89   : > { %v521_v34 = vsel %vm519_vm14, %v1419_v28, %v416_v31  ;;  %v417_v35 = vsel %vm415_vm13, %v1419_v28, %v416_v31  ;;  %v1782_v31 = vsub.s32 %v826_v8, %v1751_v43 }
  0x8a   : > { %v525_v36 = vsel %vm518_vm0, %v521_v34, %v524_v32  ;;  %v421_v37 = vsel %vm414_vm15, %v417_v35, %v420_v33 }
  0x8b   : > { %v1745_v38 = vsel %vm412_vm1, nan, %v525_v36  ;;  %v1747_v39 = vsel %vm412_vm1, nan, %v421_v37 }
  0x8c   : > { %528 = vrot.lane.b32.xlu0 %v1745_v38, %s1569_s28  ;;  %s1572_s28 = smov 112  }
  0xfe   : > { %v529_v46 = vpop.permute.xlu0 %528 }
  0xff   : > { %v532_v47 = vsel %vm531_vm2, %v1747_v39, %v529_v46 }
 0x100   : > { %v866_v49 = vrot.slane %v532_v47, %v865_v45  ;;  %1325 = vmatmul.mubr.msk.f32.vlgmr.msra.gmra.mxu0 %vm535_vm3, %v532_v47  ;;  %v1573_v47 = vmov 1983009808  }
 0x102   : > { %v867_v50 = vcombine.high %v866_v49, %v866_v49  ;;  %v874_v51 = vrot.slane %v866_v49, %v865_v45 }
 0x104   : > { %v881_v52 = vrot.slane %v867_v50, %v865_v45  ;;  %v885_v53 = vrot.slane %v874_v51, %v884_v48 }
 0x106   : > { %v889_v54 = vrot.slane %v881_v52, %v884_v48  ;;  %924 = vrot.lane.b32.xlu0 %v885_v53, %s1571_s11  ;;  %v892_v56 = vmul.f32 %v885_v53, %v852_v55  ;;  %v894_v59 = vmul.f32 %v885_v53, %v854_v57  ;;  %v896_v62 = vmul.f32 %v885_v53, %v856_v60 }
 0x107   : > { %v898_v6 = vmul.f32 %v885_v53, %v858_v1  ;;  %v638_v48 = vunpack.c.l.s4 %v1573_v47 }
 0x108   : > { %926 = vrot.lane.b32.xlu1 %v889_v54, %s1571_s11  ;;  %v900_v58 = vsel %vm535_vm3, %v892_v56, 0.0  ;;  %v906_v63 = vsel %vm535_vm3, %v894_v59, 0.0  ;;  %v895_v0 = vmul.f32 %v889_v54, %v855_v61  ;;  %v912_v4 = vsel %vm535_vm3, %v896_v62, 0.0  ;;  %v612_v59 = vld [vmem:[%s1960_s1 + $0x6] sm:$0x3] }
 0x109   : > { %v897_v9 = vmul.f32 %v889_v54, %v857_v3  ;;  %v918_v12 = vsel %vm535_vm3, %v898_v6, 0.0  ;;  %v893_v13 = vmul.f32 %v889_v54, %v853_v10  ;;  %v899_v15 = vmul.f32 %v889_v54, %v859_v11  ;;  %v609_v54 = vld [vmem:[%s1960_s1] sm:$0x3] }
 0x10a   : > { %v909_v7 = vsel %vm535_vm3, %v895_v0, 0.0  ;;  %v639_v56 = vunpack.c.0.s8 %v638_v48 }
 0x10b   : > { %v915_v14 = vsel %vm535_vm3, %v897_v9, 0.0  ;;  %v903_v16 = vsel %vm535_vm3, %v893_v13, 0.0  ;;  %v921_v17 = vsel %vm535_vm3, %v899_v15, 0.0 }
 0x10c   : > { %v1815_v6 = vsub.s32 %v639_v56, %v1751_v43 }
 0x125   : > { %901 = vadd.xlane.f32.xlu0 %v900_v58  ;;  %v611_v58 = vld [vmem:[%s1960_s1 + $0x4] sm:$0x3] }
 0x129   : > { %907 = vadd.xlane.f32.xlu0 %v906_v63 }
 0x12c   : > { %913 = vadd.xlane.f32.xlu1 %v912_v4 }
 0x12d   : > { %910 = vadd.xlane.f32.xlu0 %v909_v7 }
 0x130   : > { %919 = vadd.xlane.f32.xlu1 %v918_v12 }
 0x131   : > { %916 = vadd.xlane.f32.xlu0 %v915_v14 }
 0x134   : > { %904 = vadd.xlane.f32.xlu1 %v903_v16 }
 0x135   : > { %922 = vadd.xlane.f32.xlu0 %v921_v17 }
 0x178   : > { %v925_v22 = vpop.permute.xlu0 %924 }
 0x179   : > { %v930_v23 = vmul.f32 %v925_v22, %v852_v55  ;;  %v932_v26 = vmul.f32 %v925_v22, %v854_v57  ;;  %v934_v27 = vmul.f32 %v925_v22, %v856_v60  ;;  %v936_v29 = vmul.f32 %v925_v22, %v858_v1  ;;  %v610_v55 = vld [vmem:[%s1960_s1 + $0x2] sm:$0x3] }
 0x17a   : > { %v927_v24 = vpop.permute.xlu1 %926 }
 0x17b   : > { %946 = vrot.lane.b32.xlu1 %v930_v23, %s1572_s28  ;;  %v931_v25 = vmul.f32 %v927_v24, %v853_v10  ;;  %v933_v5 = vmul.f32 %v927_v24, %v855_v61  ;;  %v935_v28 = vmul.f32 %v927_v24, %v857_v3  ;;  %v937_v30 = vmul.f32 %v927_v24, %v859_v11 }
 0x17d   : > { %948 = vrot.lane.b32.xlu0 %v931_v25, %s1572_s28 }
 0x17f   : > { %950 = vrot.lane.b32.xlu1 %v932_v26, %s1572_s28 }
 0x181   : > { %952 = vrot.lane.b32.xlu0 %v933_v5, %s1572_s28 }
 0x183   : > { %954 = vrot.lane.b32.xlu1 %v934_v27, %s1572_s28 }
 0x185   : > { %956 = vrot.lane.b32.xlu0 %v935_v28, %s1572_s28 }
 0x187   : > { %958 = vrot.lane.b32.xlu1 %v936_v29, %s1572_s28 }
 0x189   : > { %960 = vrot.lane.b32.xlu0 %v937_v30, %s1572_s28 }
 0x1ae   : > { %v902_v32 = vpop.xlane.xlu0 %901 }
 0x1af   : > { %v1057_v33 = vrot.slane %v902_v32, %v1782_v31  ;;  %v1574_v32 = vmov 0  }
 0x1b0   : > { %1416 = vset.pattern.permute.xlu1 %v1574_v32  ;;  %1417 = vset.pattern.permute.xlu0 %v1574_v32 }
 0x1b2   : > { %v908_v34 = vpop.xlane.xlu0 %907 }
 0x1b3   : > { %v1065_v35 = vrot.slane %v908_v34, %v1782_v31 }
 0x1b5   : > { %v914_v36 = vpop.xlane.xlu1 %913 }
 0x1b6   : > { %v1073_v37 = vrot.slane %v914_v36, %v1782_v31  ;;  %v911_v41 = vpop.xlane.xlu0 %910 }
 0x1b7   : > { %v1069_v42 = vrot.slane %v911_v41, %v1782_v31 }
 0x1b9   : > { %v1789_v44 = vsel %vm843_vm4, %v1069_v42, %v1065_v35  ;;  %v920_v40 = vpop.xlane.xlu1 %919 }
 0x1ba   : > { %v1081_v45 = vrot.slane %v920_v40, %v1782_v31  ;;  %v917_v46 = vpop.xlane.xlu0 %916 }
 0x1bb   : > { %v1077_v49 = vrot.slane %v917_v46, %v1782_v31  ;;  %v1304_v46 = vld [vmem:[#allocation3] ss:$0 sm:$0xff] }
 0x1bd   : > { %v1794_v50 = vsel %vm843_vm4, %v1077_v49, %v1073_v37  ;;  %v905_v51 = vpop.xlane.xlu1 %904 }
 0x1be   : > { %v1061_v52 = vrot.slane %v905_v51, %v1782_v31  ;;  %v923_v53 = vpop.xlane.xlu0 %922 }
 0x1bf   : > { %v1085_v57 = vrot.slane %v923_v53, %v1782_v31  ;;  %v652_v53 = vcombine.low %v1304_v46, %v1304_v46 }
 0x1c0   : > { %v1086_v60 = vsel %vm843_vm4, %v1061_v52, %v1057_v33  ;;  %v605_v61 = vpop.f32.mrf.mxu0 }
 0x1c1   : > { %v1812_v62 = vsel %vm843_vm4, %v1085_v57, %v1081_v45  ;;  %v613_v63 = vadd.f32 %v609_v54, %v605_v61  ;;  %v614_v0 = vadd.f32 %v610_v55, %v605_v61  ;;  %v615_v1 = vadd.f32 %v611_v58, %v605_v61 }
 0x1c2   : > { %v616_v3 = vadd.f32 %v612_v59, %v605_v61  ;;  %v1326_v4 = vpop.f32.mrf.mxu0  ;;  %v1835_v42 = vmul.f32 %v1086_v60, %v1745_v38  ;;  %v1847_v54 = vmul.f32 %v1789_v44, %v1745_v38  ;;  %v1860_v44 = vmul.f32 %v1794_v50, %v1745_v38 }
 0x1c3   : > { %v617_v7 = vmax.f32 %v613_v63, 0.0  ;;  %v618_v9 = vmax.f32 %v614_v0, 0.0  ;;  %v619_v10 = vmax.f32 %v615_v1, 0.0  ;;  %v659_v63 = vrot.slane %v652_v53, %v1815_v6 }
 0x1c4   : > { %v620_v11 = vmax.f32 %v616_v3, 0.0 }
 0x1c5   : > { %v635_v12 = vcombine.low %v617_v7, %v618_v9 }
 0x1c6   : > { %v636_v13 = vcombine.low %v619_v10, %v620_v11  ;;  %v660_v10 = vcombine.low %v659_v63, %v659_v63  ;;  %v1872_v11 = vmul.f32 %v1812_v62, %v1745_v38 }
 0x1c7   : > { %v643_v14 = vrot.slane %v635_v12, %v1815_v6 }
 0x1c8   : > { %v650_v15 = vrot.slane %v636_v13, %v1815_v6 }
 0x1ca   : > { %v651_v16 = vcombine.low %v643_v14, %v650_v15 }
 0x1cc   : > { %1336 = vmatmul.mubr.msk.f32.vlgmr.msra.gmra.mxu1 %vm662_vm5, %v651_v16 }
 0x1ed   : > { %v947_v17 = vpop.permute.xlu1 %946 }
 0x1ee   : > { %v970_v18 = vsel %vm535_vm3, %v947_v17, 0.0 }
 0x1ef   : > { %v949_v19 = vpop.permute.xlu0 %948  ;;  %971 = vadd.xlane.f32.xlu1 %v970_v18 }
 0x1f0   : > { %v973_v20 = vsel %vm535_vm3, %v949_v19, 0.0 }
 0x1f1   : > { %974 = vadd.xlane.f32.xlu0 %v973_v20  ;;  %v951_v21 = vpop.permute.xlu1 %950 }
 0x1f2   : > { %v976_v22 = vsel %vm535_vm3, %v951_v21, 0.0 }
 0x1f3   : > { %v953_v23 = vpop.permute.xlu0 %952  ;;  %977 = vadd.xlane.f32.xlu1 %v976_v22 }
 0x1f4   : > { %v979_v24 = vsel %vm535_vm3, %v953_v23, 0.0 }
 0x1f5   : > { %980 = vadd.xlane.f32.xlu0 %v979_v24  ;;  %v955_v25 = vpop.permute.xlu1 %954 }
 0x1f6   : > { %v982_v26 = vsel %vm535_vm3, %v955_v25, 0.0 }
 0x1f7   : > { %v957_v5 = vpop.permute.xlu0 %956  ;;  %983 = vadd.xlane.f32.xlu1 %v982_v26 }
 0x1f8   : > { %v985_v27 = vsel %vm535_vm3, %v957_v5, 0.0 }
 0x1f9   : > { %986 = vadd.xlane.f32.xlu0 %v985_v27  ;;  %v959_v28 = vpop.permute.xlu1 %958 }
 0x1fa   : > { %v988_v29 = vsel %vm535_vm3, %v959_v28, 0.0 }
 0x1fb   : > { %v961_v30 = vpop.permute.xlu0 %960  ;;  %989 = vadd.xlane.f32.xlu1 %v988_v29 }
 0x1fc   : > { %v991_v8 = vsel %vm535_vm3, %v961_v30, 0.0 }
 0x1fd   : > { %992 = vadd.xlane.f32.xlu0 %v991_v8 }
 0x278   : > { %v972_v33 = vpop.xlane.xlu1 %971 }
 0x279   : > { %v1005_v35 = vrot.slane %v972_v33, %v1782_v31 }
 0x27a   : > { %v975_v34 = vpop.xlane.xlu0 %974 }
 0x27b   : > { %v1009_v36 = vrot.slane %v975_v34, %v1782_v31 }
 0x27c   : > { %v978_v37 = vpop.xlane.xlu1 %977 }
 0x27d   : > { %v1034_v41 = vsel %vm843_vm4, %v1009_v36, %v1005_v35  ;;  %v1013_v47 = vrot.slane %v978_v37, %v1782_v31 }
 0x27e   : > { %v1838_v40 = vmul.f32 %v1034_v41, %v1747_v39  ;;  %v981_v45 = vpop.xlane.xlu0 %980 }
 0x27f   : > { %v1017_v48 = vrot.slane %v981_v45, %v1782_v31 }
 0x280   : > { %v984_v49 = vpop.xlane.xlu1 %983  ;;  %v1098_v51 = vsub.f32 %v1838_v40, %v1835_v42 }
 0x281   : > { %v1035_v52 = vsel %vm843_vm4, %v1017_v48, %v1013_v47  ;;  %v1021_v57 = vrot.slane %v984_v49, %v1782_v31 }
 0x282   : > { %v1850_v55 = vmul.f32 %v1035_v52, %v1747_v39  ;;  %v987_v56 = vpop.xlane.xlu0 %986 }
 0x283   : > { %v1025_v58 = vrot.slane %v987_v56, %v1782_v31 }
 0x284   : > { %v990_v59 = vpop.xlane.xlu1 %989  ;;  %v1099_v60 = vsub.f32 %v1850_v55, %v1847_v54 }
 0x285   : > { %v1036_v61 = vsel %vm843_vm4, %v1025_v58, %v1021_v57  ;;  %v1029_v3 = vrot.slane %v990_v59, %v1782_v31 }
 0x286   : > { %v1863_v0 = vmul.f32 %v1036_v61, %v1747_v39  ;;  %v993_v1 = vpop.xlane.xlu0 %992 }
 0x287   : > { %v1033_v4 = vrot.slane %v993_v1, %v1782_v31 }
 0x288   : > { %v1100_v7 = vsub.f32 %v1863_v0, %v1860_v44 }
 0x289   : > { %v1037_v9 = vsel %vm843_vm4, %v1033_v4, %v1029_v3 }
 0x28a   : > { %v1875_v50 = vmul.f32 %v1037_v9, %v1747_v39 }
 0x28c   : > { %v731_v12 = vpop.f32.mrf.mxu1  ;;  %v1101_v13 = vsub.f32 %v1875_v50, %v1872_v11 }
 0x28d   : > { %v732_v14 = vadd.f32 %v731_v12, %v660_v10 }
 0x28e   : > { %v1337_v15 = vpop.f32.mrf.mxu1 }
 0x28f   : > { %v736_v16 = vcombine.high %v732_v14, %v732_v14  ;;  %v743_v17 = vrot.slane %v732_v14, %v1815_v6 }
 0x291   : > { %v750_v18 = vrot.slane %v736_v16, %v1815_v6  ;;  %v751_v19 = vcombine.high %v743_v17, %v743_v17  ;;  %v757_v20 = vsub.f32 0.0, %v743_v17 }
 0x293   : > { %v752_v21 = vcombine.high %v750_v18, %v750_v18  ;;  %v758_v22 = vsub.f32 0.0, %v751_v19  ;;  %v759_v38 = vsub.f32 0.0, %v750_v18  ;;  %v761_v62 = vmul.f32 1.442695, %v757_v20 }
 0x295   : > { %v760_v23 = vsub.f32 0.0, %v752_v21  ;;  %1422 = vpow2.f32 %v761_v62  ;;  %v763_v39 = vmul.f32 1.442695, %v758_v22  ;;  %v765_v24 = vmul.f32 1.442695, %v759_v38 }
 0x297   : > { %1424 = vpow2.f32 %v763_v39  ;;  %v767_v25 = vmul.f32 1.442695, %v760_v23 }
 0x298   : > { %1426 = vpow2.f32 %v765_v24 }
 0x299   : > { %1428 = vpow2.f32 %v767_v25 }
 0x2a2   : > { %v1423_v26 = vpop.eup %1422 }
 0x2a3   : > { %v769_v5 = vadd.f32 1.0, %v1423_v26 }
 0x2a4   : > { %v1425_v27 = vpop.eup %1424 }
 0x2a5   : > { %v770_v28 = vadd.f32 1.0, %v1425_v27  ;;  %1430 = vrcp.f32 %v769_v5  ;;  %v1427_v29 = vpop.eup %1426 }
 0x2a6   : > { %v771_v30 = vadd.f32 1.0, %v1427_v29  ;;  %v1429_v8 = vpop.eup %1428 }
 0x2a7   : > { %1432 = vrcp.f32 %v770_v28  ;;  %v772_v32 = vadd.f32 1.0, %v1429_v8 }
 0x2a8   : > { %1434 = vrcp.f32 %v771_v30 }
 0x2a9   : > { %1436 = vrcp.f32 %v772_v32 }
 0x2b2   : > { %v1431_v33 = vpop.eup %1430 }
 0x2b3   : > { %1103 = vperm.xlu1 %1416, %v1431_v33   ;;  %v791_v35 = vrot.slane %v1431_v33, %v1815_v6 }
 0x2b4   : > { %v1433_v34 = vpop.eup %1432 }
 0x2b5   : > { %v798_v36 = vrot.slane %v1433_v34, %v1815_v6  ;;  %v1435_v37 = vpop.eup %1434 }
 0x2b6   : > { %v805_v41 = vrot.slane %v1435_v37, %v1815_v6  ;;  %v1437_v45 = vpop.eup %1436 }
 0x2b7   : > { %814 = vperm.xlu1 %1416, %v791_v35   ;;  %817 = vperm.xlu0 %1417, %v798_v36   ;;  %v812_v46 = vrot.slane %v1437_v45, %v1815_v6 }
 0x2bb   : > { %1114 = vperm.xlu0 %1417, %v1433_v34   ;;  %1125 = vperm.xlu1 %1416, %v1435_v37  }
 0x2bf   : > { %820 = vperm.xlu1 %1416, %v805_v41  }
 0x2c3   : > { %823 = vperm.xlu1 %1416, %v812_v46  }
 0x2c7   : > { %1136 = vperm.xlu1 %1416, %v1437_v45  }
 0x2c8   : > { %1477 = shalt.err (!%p1474_p0)
}
 0x2c9   : > { %s1478_s25 = scalar_lea.hbm %s1177_s13, 32  ;;  %s1482_s19 = scalar_lea.hbm %s1965_s6, 96 }
 0x2ca   : > { %p1479_p1 = scmp.ne.s32.totalorder %s1177_s13, %s1478_s25  ;;  %p1483_p7 = scmp.lt.s32.totalorder %s1177_s13, %s1965_s6 }
 0x2cb   : > { %p1484_p2 = scmp.lt.s32.totalorder %s1482_s19, %s1478_s25 }
 0x2cc   : > { %p1480_p3 = pnand %p1479_p1, %p1666_p5 }
 0x2cd   : > { %p1485_p6 = por %p1484_p2, %p1483_p7 }
 0x2ce   : > { %p1481_p4 = pneg %p1480_p3 }
 0x2d0   : > { %p1486_p8 = pnand %p1485_p6, %p1481_p4 }
 0x2d2   : > { %1489 = shalt.err (!%p1486_p8)
}
 0x2d3   : > { %1346 = dma.vmem_to_hbm [thread:$0]  (%p1666_p5), %s1180_s14, 32, %s1177_s13, %s1162_s20   ;;  %v1576_v6 = vmov 269488144   ;;  %vm845_vm7 = vcmask 1042434   ;;  %vm847_vm8 = vcmask 1043459   ;;  %vm850_vm9 = vcmask 11264  }
 0x2d4   : > { %v1107_v47 = vunpack.c.l.s4 %v1576_v6  ;;  %s1577_s16 = smov [#allocation8]   ;;  %p1973_p9 = scmp.eq.s32.totalorder %s1647_s5, 2 }
 0x2d5   : > { %s1190_s13 = sshll.u32 %s1577_s16, 4  ;;  %s1191_s13 = int_to_ptr.vmem [resolvable:$true] %s1190_s13 }
 0x2d6   : > { %v1108_v48 = vunpack.c.0.s8 %v1107_v47  ;;  %p1497_p12 = scmp.lt.s32.totalorder %s1191_s13, %s1191_s13 }
 0x2d8   : > { %v1111_v52 = vsub.s32 %v1108_v48, %v1751_v43 }
 0x32e   : > { %v1104_v49 = vpop.permute.xlu1 %1103 }
 0x32f   : > { %v1112_v57 = vrot.slane %v1104_v49, %v1111_v52 }
 0x331   : > { %v1146_v61 = vmul.f32 %v1112_v57, %v1098_v51 }
 0x332   : > { %v815_v53 = vpop.permute.xlu1 %814  ;;  %v818_v56 = vpop.permute.xlu0 %817 }
 0x333   : > { %v1150_v9 = vsel %vm318_vm6, %v1146_v61, 0.0  ;;  %v830_v10 = vrot.slane %v815_v53, %v1782_v31  ;;  %v834_v12 = vrot.slane %v818_v56, %v1782_v31 }
 0x335   : > { %v844_v44 = vsel %vm843_vm4, %v834_v12, %v830_v10 }
 0x336   : > { %v1115_v58 = vpop.permute.xlu0 %1114  ;;  %v1126_v59 = vpop.permute.xlu1 %1125 }
 0x337   : > { %v1123_v63 = vrot.slane %v1115_v58, %v1111_v52  ;;  %v1134_v1 = vrot.slane %v1126_v59, %v1111_v52 }
 0x339   : > { %v1147_v3 = vmul.f32 %v1123_v63, %v1099_v60  ;;  %v1148_v4 = vmul.f32 %v1134_v1, %v1100_v7 }
 0x33a   : > { %v821_v43 = vpop.permute.xlu1 %820 }
 0x33b   : > { %v1151_v42 = vsel %vm318_vm6, %v1147_v3, 0.0  ;;  %v838_v51 = vrot.slane %v821_v43, %v1782_v31  ;;  %v1153_v54 = vsel %vm318_vm6, %v1148_v4, 0.0 }
 0x33c   : > { %v1152_v40 = vadd.f32 %v1151_v42, %v1150_v9 }
 0x33d   : > { %v846_v7 = vsel %vm845_vm7, %v838_v51, %v844_v44 }
 0x33e   : > { %v1154_v55 = vadd.f32 %v1153_v54, %v1152_v40  ;;  %v824_v60 = vpop.permute.xlu1 %823 }
 0x33f   : > { %v842_v0 = vrot.slane %v824_v60, %v1782_v31 }
 0x341   : > { %v848_v14 = vsel %vm847_vm8, %v842_v0, %v846_v7 }
 0x342   : > { %851 = vst.msk [vmem:[%s1705_s18] sm:$0xf] %vm850_vm9, %v848_v14  ;;  %v1137_v15 = vpop.permute.xlu1 %1136  ;;  %s1490_s18 = scalar_lea.vmem %s1191_s13, 32 }
 0x343   : > { %v1145_v16 = vrot.slane %v1137_v15, %v1111_v52  ;;  %p1491_p5 = scmp.ne.s32.totalorder %s1191_s13, %s1490_s18  ;;  %p1498_p13 = scmp.lt.s32.totalorder %s1490_s18, %s1490_s18 }
 0x345   : > { %v1149_v17 = vmul.f32 %v1145_v16, %v1101_v13  ;;  %p1492_p10 = pnand %p1491_p5, %p1973_p9  ;;  %p1499_p0 = por %p1498_p13, %p1497_p12 }
 0x347   : > { %v1155_v18 = vsel %vm318_vm6, %v1149_v17, 0.0  ;;  %p1493_p11 = pneg %p1492_p10 }
 0x348   : > { %v1156_v19 = vadd.f32 %v1155_v18, %v1154_v55 }
 0x349   : > { %p1500_p1 = pnand %p1499_p0, %p1493_p11 }
 0x34a   : > { %v1157_v20 = vmul.f32 %v1156_v19, %v1145_v16 }
 0x34c   : > { %v1158_v21 = vsub.f32 %v1713_v2, %v1157_v20 }
 0x34e   : > { %1159 = vst.msk [vmem:[#allocation2] sm:$0x3] %vm318_vm6, %v1158_v21  ;;  %1160 = vst.msk [vmem:[#allocation8] sm:$0x3] %vm318_vm6, %v1158_v21 }
 0x34f   : > { %1503 = shalt.err (!%p1500_p1)
}
 0x350   : > { %p1974_p3 = pmov %p1973_p9 }
 0x352   : > { %1348 = dma.vmem_to_hbm [thread:$0]  (%p1974_p3), %s1191_s13, 32, %s1966_s7, [#allocation9]  }
 0x353   : > { %p1975_p4 = pmov %p1974_p3 }
 0x354   : > { %p1976_p7 = pmov %p1974_p3 }
 0x355   : > { %1535 = dma.done.wait (%p1975_p4), [#allocation9], 32  }
 0x356   : > { %1537 = vsyncadd (%p1976_p7), [#allocation9], 4294967264 }
 0x357 PF: > { %p1364_p2 = scmp.ge.s32.totalorder %s1556_s10, 2  ;;  %s1209_s21 = sand.u32 1, %s1544_s29  }
 0x358   : > { %p1977_p6 = scmp.ne.s32.totalorder %s1970_s17, 0  ;;  %s1210_s22 = scalar_lea.sflag [#allocation6], %s1209_s21 }
 0x35a   : > { %p1357_p8 = pnand %p1364_p2, %p1977_p6 }
 0x35c   : > { %p1358_p5 = pneg %p1357_p8 }
 0x35e   : > { %1539 = dma.done.wait (%p1358_p5), %s1210_s22, 32  }
 0x35f   : > { %1541 = vsyncadd (%p1358_p5), %s1210_s22, 4294967264  ;;  %p23_p9 = scmp.ge.s32.totalorder %s1651_s12, 5   ;;  %s1978_s29 = smov %s1548_s30 }
 0x360   : > { %s1979_s30 = smov %s1552_s9  ;;  %s1980_s9 = smov %s1662_s15 }
 0x361   : > { %s1981_s10 = smov %s1651_s12  ;;  %25 = sbr.rel (!%p23_p9) target bundleno = 8 (0x8), region = 105 }
 0x366   :  { %1222 = vsyncpa [#allocation5], 1 }
 0x367   :  { %1224 = vsyncpa [#allocation5 + $0x1], 1 }
 0x368   :  { %1225 = vsyncpa [#allocation6], 1 }
 0x369   :  { %1227 = vsyncpa [#allocation6 + $0x1], 1 }
 0x36a   :  { %1228 = vsyncpa [#allocation9], 1 }

</bundles_post_ra>
